<compile_context>
chip_gen: v6e
topology: v6e:2x2x1
jax: 0.10.0
libtpu: 0.0.40
codegen_flags: <defaults>
</compile_context>

<pallas_src>
import jax
import jax.numpy as jnp
from jax.experimental import pallas as pl
from jax.experimental.pallas import tpu as pltpu


_LANE = 128
_SUBLANE = 8

# Conservative VMEM budgets (bytes), safe across v5e (16 MiB scoped default),
# v6e (32 MiB default / 128 MiB physical) and v7x (32 MiB default / 64 MiB).
_SINGLE_STEP_VMEM_BUDGET = 12 * 1024 * 1024   # no compiler-param override needed
_TILED_VMEM_BUDGET = 24 * 1024 * 1024         # streamed-path working set target
_TILED_VMEM_LIMIT = 32 * 1024 * 1024          # explicit vmem_limit for tiled path


def _round_up(n, m):
    return (n + m - 1) // m * m


# ---------------------------------------------------------------------------
# Kernels
# ---------------------------------------------------------------------------

def _mlp_single_kernel(x_ref, w1_ref, b1_ref, w2_ref, b2_ref, o_ref):
    # x_ref : (1, D) f32     w1_ref: (D, H) bf16
    # b1_ref: (1, H) f32     w2_ref: (H, O) bf16
    # b2_ref: (1, O) f32     o_ref : (1, O) f32
    h = jnp.dot(x_ref[...].astype(jnp.bfloat16), w1_ref[...],
                preferred_element_type=jnp.float32)
    h = jnp.maximum(h + b1_ref[...], 0.0)                 # bias + ReLU in f32
    y = jnp.dot(h.astype(w2_ref.dtype), w2_ref[...],
                preferred_element_type=jnp.float32) + b2_ref[...]
    o_ref[...] = y.astype(o_ref.dtype)


def _mlp_tiled_kernel(x_ref, w1_ref, b1_ref, w2_ref, b2_ref, o_ref, acc_ref):
    # Fallback for large input_size: stream W1 as (TK, H) bf16 slabs over a
    # K grid, accumulate the hidden pre-activation in a f32 VMEM scratch.
    k = pl.program_id(0)

    @pl.when(k == 0)
    def _():
        acc_ref[...] = jnp.zeros_like(acc_ref)

    acc_ref[...] += jnp.dot(x_ref[...].astype(jnp.bfloat16), w1_ref[...],
                            preferred_element_type=jnp.float32)

    @pl.when(k == pl.num_programs(0) - 1)
    def _():
        h = jnp.maximum(acc_ref[...] + b1_ref[...], 0.0)
        y = jnp.dot(h.astype(w2_ref.dtype), w2_ref[...],
                    preferred_element_type=jnp.float32) + b2_ref[...]
        o_ref[...] = y.astype(o_ref.dtype)


# ---------------------------------------------------------------------------
# One-time parameter repacking (NOT on the per-call hot path)
# ---------------------------------------------------------------------------

def prepare_params(w1, b1, w2, b2):
    """Repack PyTorch-layout Linear params once at init time.

    w1: (H, D), b1: (H,), w2: (O, H), b2: (O,)  -- torch nn.Linear layout.
    Weights are transposed to (in, out) and stored in bf16 (accumulation stays
    f32 in-kernel).  No feature-dim zero padding.
    """
    hidden, D = w1.shape
    out = w2.shape[0]

    # Rough VMEM footprint of the single-invocation path (layout-padded).
    hid_vmem = _round_up(hidden, _LANE)
    out_vmem = _round_up(out, _LANE)
    single_bytes = (D * hid_vmem * 2                 # W1 (bf16, lane-padded)
                    + _SUBLANE * D * 4               # x (f32, sublane-padded)
                    + hid_vmem * out_vmem * 2        # W2
                    + 4 * _SUBLANE * _LANE * 4)      # b1 / b2 / hidden / out rows

    if single_bytes <= _SINGLE_STEP_VMEM_BUDGET:
        tk, Dp, kt = D, D, 1
    else:
        # Double-buffered streaming bytes per reduction element (lane/sublane
        # padded): W1 row (bf16) + x column (f32).
        per_k = 2 * (hid_vmem * 2) + 2 * (_SUBLANE * 4)
        tk = max(_LANE, ((_TILED_VMEM_BUDGET // per_k) // _LANE) * _LANE)
        Dp = _round_up(D, tk)
        kt = Dp // tk

    w1t = jnp.transpose(w1).astype(jnp.bfloat16)          # (D, H)
    if Dp != D:
        # Zero-pad the reduction dim once; x is zero-padded per call to match
        # (never rely on OOB reads: NaN * 0 == NaN would corrupt the acc).
        w1t = jnp.zeros((Dp, hidden), jnp.bfloat16).at[:D, :].set(w1t)
    b1p = b1.astype(jnp.float32).reshape(1, hidden)
    w2t = jnp.transpose(w2).astype(jnp.bfloat16)           # (H, O)
    b2p = b2.astype(jnp.float32).reshape(1, out)

    return {
        "w1t": w1t, "b1": b1p, "w2t": w2t, "b2": b2p,
        "input_size": D, "padded_input_size": Dp,
        "tile_k": tk, "k_tiles": kt,
        "hidden_size": hidden, "output_size": out,
    }


# ---------------------------------------------------------------------------
# Forward pass
# ---------------------------------------------------------------------------

def sparse_encoder_forward(x, params):
    """x: any-shape tensor with x.size == input_size. Returns (output_size,) f32."""
    w1t, b1, w2t, b2 = params["w1t"], params["b1"], params["w2t"], params["b2"]
    D = params["input_size"]
    Dp = params["padded_input_size"]
    tk = params["tile_k"]
    kt = params["k_tiles"]
    hidden = params["hidden_size"]
    out = params["output_size"]

    # Only the reshape lives in the wrapper; the bf16 cast is in-kernel.
    x2 = x.reshape(1, D).astype(jnp.float32)

    if kt == 1:
        # Whole MLP in one kernel invocation: no grid, no pipeline machinery,
        # no accumulator scratch; everything resident in VMEM once.
        y = pl.pallas_call(
            _mlp_single_kernel,
            out_shape=jax.ShapeDtypeStruct((1, out), jnp.float32),
        )(x2, w1t, b1, w2t, b2)
    else:
        if Dp != D:
            x2 = jnp.pad(x2, ((0, 0), (0, Dp - D)))
        y = pl.pallas_call(
            _mlp_tiled_kernel,
            out_shape=jax.ShapeDtypeStruct((1, out), jnp.float32),
            grid_spec=pltpu.PrefetchScalarGridSpec(
                num_scalar_prefetch=0,
                grid=(kt,),
                in_specs=[
                    pl.BlockSpec((1, tk), lambda k: (0, k)),        # x tile (streamed)
                    pl.BlockSpec((tk, hidden), lambda k: (k, 0)),   # W1 slab (streamed)
                    pl.BlockSpec((1, hidden), lambda k: (0, 0),
                                 pipeline_mode=pl.Buffered(1)),     # b1 (resident)
                    pl.BlockSpec((hidden, out), lambda k: (0, 0),
                                 pipeline_mode=pl.Buffered(1)),     # W2 (resident)
                    pl.BlockSpec((1, out), lambda k: (0, 0),
                                 pipeline_mode=pl.Buffered(1)),     # b2 (resident)
                ],
                out_specs=pl.BlockSpec((1, out), lambda k: (0, 0)),
                scratch_shapes=[pltpu.VMEM((1, hidden), jnp.float32)],
            ),
            compiler_params=pltpu.CompilerParams(
                dimension_semantics=("arbitrary",),   # K is a reduction axis
                vmem_limit_bytes=_TILED_VMEM_LIMIT,
            ),
        )(x2, w1t, b1, w2t, b2)
    return y[0]


def l1(weight):
    # Training-time sparsity penalty helper (not part of forward).
    return jnp.sum(jnp.abs(weight))


def init_params(key, input_size, hidden_size, output_size):
    """Deterministic PyTorch-style (uniform +/- 1/sqrt(fan_in)) init, torch layout."""
    k1, k2, k3, k4 = jax.random.split(key, 4)
    lim1 = 1.0 / jnp.sqrt(input_size)
    lim2 = 1.0 / jnp.sqrt(hidden_size)
    w1 = jax.random.uniform(k1, (hidden_size, input_size), jnp.float32, -lim1, lim1)
    b1 = jax.random.uniform(k2, (hidden_size,), jnp.float32, -lim1, lim1)
    w2 = jax.random.uniform(k3, (output_size, hidden_size), jnp.float32, -lim2, lim2)
    b2 = jax.random.uniform(k4, (output_size,), jnp.float32, -lim2, lim2)
    return w1, b1, w2, b2


if __name__ == "__main__":
    # Input consistent with an NCHW image batch: [2, 4, 16, 16] -> flattened 2048.
    N, C, H, W = 2, 4, 16, 16
    input_size = N * C * H * W          # 2048
    hidden_size = 64
    output_size = 32
    coef_l1 = 1e-3                      # unused in forward (only in l1() helper)

    key = jax.random.PRNGKey(0)
    kx, kp = jax.random.split(key)
    x = jax.random.normal(kx, (N, C, H, W), jnp.float32)
    w1, b1, w2, b2 = init_params(kp, input_size, hidden_size, output_size)

    # One-time repack (transpose / bf16) -- NOT on the per-call hot path.
    params = prepare_params(w1, b1, w2, b2)

    fwd = jax.jit(lambda inp: sparse_encoder_forward(inp, params))
    y = jax.block_until_ready(fwd(x))

    # Pure-JAX reference with the same bf16 weight/activation quantization
    # (f32 accumulation), matching the in-kernel numerics.
    xb = x.reshape(-1).astype(jnp.bfloat16).astype(jnp.float32)
    w1b = w1.astype(jnp.bfloat16).astype(jnp.float32)
    w2b = w2.astype(jnp.bfloat16).astype(jnp.float32)
    h_ref = jnp.maximum(xb @ w1b.T + b1, 0.0)
    ref = h_ref.astype(jnp.bfloat16).astype(jnp.float32) @ w2b.T + b2

    assert y.shape == (output_size,)
    assert jnp.allclose(y, ref, atol=1e-2, rtol=1e-2)

    print("KERNEL_OK")
</pallas_src>

<mosaic_0001>
module attributes {stable_mosaic.version = 11 : i64} {
  func.func @_mlp_single_kernel(%arg0: memref<1x2048xf32, #tpu.memory_space<vmem>>, %arg1: memref<2048x64xbf16, #tpu.memory_space<vmem>>, %arg2: memref<1x64xf32, #tpu.memory_space<vmem>>, %arg3: memref<64x32xbf16, #tpu.memory_space<vmem>>, %arg4: memref<1x32xf32, #tpu.memory_space<vmem>>, %arg5: memref<1x32xf32, #tpu.memory_space<vmem>>) attributes {dimension_semantics = [], scalar_prefetch = 0 : i64, scratch_operands = 0 : i64, tpu.core_type = #tpu.core_type<tc>} {
    %c0 = arith.constant 0 : index
    %c0_0 = arith.constant 0 : index
    %0 = vector.load %arg0[%c0, %c0_0] : memref<1x2048xf32, #tpu.memory_space<vmem>>, vector<1x2048xf32>
    %1 = arith.truncf %0 : vector<1x2048xf32> to vector<1x2048xbf16>
    %c0_1 = arith.constant 0 : index
    %c0_2 = arith.constant 0 : index
    %2 = vector.load %arg1[%c0_1, %c0_2] : memref<2048x64xbf16, #tpu.memory_space<vmem>>, vector<2048x64xbf16>
    %cst = arith.constant dense<0.000000e+00> : vector<1x64xf32>
    %3 = tpu.matmul %1, %2, %cst {dimension_numbers = #tpu.dot_dimension_numbers<[1], [0], [0], [1], [0, 0, 1, 1], [], []>} : vector<1x2048xbf16>, vector<2048x64xbf16>, vector<1x64xf32> -> vector<1x64xf32>
    %c0_3 = arith.constant 0 : index
    %c0_4 = arith.constant 0 : index
    %4 = vector.load %arg2[%c0_3, %c0_4] : memref<1x64xf32, #tpu.memory_space<vmem>>, vector<1x64xf32>
    %5 = arith.addf %3, %4 : vector<1x64xf32>
    %cst_5 = arith.constant 0.000000e+00 : f32
    %6 = vector.broadcast %cst_5 : f32 to vector<1x64xf32>
    %7 = arith.maximumf %5, %6 : vector<1x64xf32>
    %8 = arith.truncf %7 : vector<1x64xf32> to vector<1x64xbf16>
    %c0_6 = arith.constant 0 : index
    %c0_7 = arith.constant 0 : index
    %9 = vector.load %arg3[%c0_6, %c0_7] : memref<64x32xbf16, #tpu.memory_space<vmem>>, vector<64x32xbf16>
    %cst_8 = arith.constant dense<0.000000e+00> : vector<1x32xf32>
    %10 = tpu.matmul %8, %9, %cst_8 {dimension_numbers = #tpu.dot_dimension_numbers<[1], [0], [0], [1], [0, 0, 1, 1], [], []>} : vector<1x64xbf16>, vector<64x32xbf16>, vector<1x32xf32> -> vector<1x32xf32>
    %c0_9 = arith.constant 0 : index
    %c0_10 = arith.constant 0 : index
    %11 = vector.load %arg4[%c0_9, %c0_10] : memref<1x32xf32, #tpu.memory_space<vmem>>, vector<1x32xf32>
    %12 = arith.addf %10, %11 : vector<1x32xf32>
    %c0_11 = arith.constant 0 : index
    %c0_12 = arith.constant 0 : index
    %13 = vector.load %arg5[%c0_11, %c0_12] : memref<1x32xf32, #tpu.memory_space<vmem>>, vector<1x32xf32>
    tpu.vector_store %arg5[%c0_11, %c0_12], %12 {strides = array<i32>} : memref<1x32xf32, #tpu.memory_space<vmem>>, vector<1x32xf32>,
    return
  }
}

</mosaic_0001>

<bundles_post_ra>
// kernel: _lambda_.1
= control target key start
LH: loop header
LB: loop body
LE: loop exit
PB: predicated region body
PF: predicated region fallthrough
CT: control target
= control target key end

     0   :  { %10 = vsyncpa [#allocation3], 0  ;;  %s2213_s0 = inlined_call_operand.vmem [shape: f32[1,2048], index: 0, kind: input, shape index: {}]   ;;  %s2214_s1 = inlined_call_operand.hbm [shape: bf16[2048,64], index: 1, kind: input, shape index: {}]   ;;  %s2215_s2 = inlined_call_operand.vmem [shape: f32[1,64], index: 2, kind: input, shape index: {}]   ;;  %s2216_s3 = inlined_call_operand.vmem [shape: bf16[64,32], index: 3, kind: input, shape index: {}]   ;;  %s2217_s4 = inlined_call_operand.vmem [shape: f32[1,32], index: 4, kind: input, shape index: {}]   ;;  %s2218_s5 = inlined_call_operand.hbm [shape: f32[1,32], index: 5, kind: output, shape index: {}]  }
   0x1   :  { %11 = vsyncpa [#allocation4], 0  ;;  %s2085_s18 = smov [#allocation2]  }
   0x2   :  { %s19_s19 = sshll.u32 %s2085_s18, 4  ;;  %s20_s19 = int_to_ptr.vmem [resolvable:$true] %s19_s19 }
   0x3   :  { %s2049_s20 = scalar_lea.vmem %s20_s19, 16384  ;;  %p2054_p1 = scmp.lt.s32.totalorder %s20_s19, %s20_s19 }
   0x4   :  { %p2050_p0 = scmp.ne.s32.totalorder %s20_s19, %s2049_s20  ;;  %p2055_p2 = scmp.lt.s32.totalorder %s2049_s20, %s2049_s20 }
   0x6   :  { %p2056_p3 = por %p2055_p2, %p2054_p1 }
   0x8   :  { %p2057_p4 = pnand %p2056_p3, %p2050_p0 }
   0xa   :  { %2060 = shalt.err (!%p2057_p4)
}
   0xb   :  { %s2086_s21 = smov 64   ;;  %s2087_s22 = smov 4  }
   0xc   :  { %25 = dma.hbm_to_vmem [thread:$0]  %s2214_s1, 16384, %s20_s19, [#allocation3], %s2086_s21, %s2086_s21, %s2087_s22  }
   0xd   :  { %2081 = dma.done.wait [#allocation3], 16384  }
   0xe   :  { %2082 = vsyncadd [#allocation3], 4294950912  ;;  %v1909_v0 = vld [vmem:[#allocation2 + $0x78] sm:$0xff]   ;;  %v1913_v4 = vld [vmem:[#allocation2 + $0x70] sm:$0xff]   ;;  %v40_v18 = vlaneseq  ;;  %vm2089_vm0 = vmmov 0   ;;  %vm1516_vm1 = vcmask 523264  }
   0xf   :  { %v1910_v1 = vld [vmem:[#allocation2 + $0xf8] sm:$0xff]   ;;  %1710 = vmatprep.subr.bf16.mxu0 %v1909_v0  ;;  %v1914_v5 = vld [vmem:[#allocation2 + $0xf0] sm:$0xff]   ;;  %v1917_v8 = vld [vmem:[#allocation2 + $0x68] sm:$0xff]   ;;  %s2090_s12 = smov [#allocation5]   ;;  %vm1560_vm2 = vcmask 253952  }
  0x10   :  { %v1911_v2 = vld [vmem:[#allocation2 + $0x38] sm:$0xff]   ;;  %1732 = vmatprep.subr.bf16.mxu1 %v1910_v1  ;;  %v1915_v6 = vld [vmem:[#allocation2 + $0x30] sm:$0xff]   ;;  %v1918_v9 = vld [vmem:[#allocation2 + $0xe8] sm:$0xff]   ;;  %v2124_v23 = vshrl.u32 %v40_v18, 7  ;;  %s1568_s13 = sshll.u32 %s2090_s12, 4  ;;  %s1569_s13 = int_to_ptr.vmem [resolvable:$true] %s1568_s13 }
  0x11   :  { %v1912_v3 = vld [vmem:[#allocation2 + $0xb8] sm:$0xff]   ;;  %1711 = vmatpush3.bf16.msra.mxu0 %v1911_v2  ;;  %v1916_v7 = vld [vmem:[#allocation2 + $0xb0] sm:$0xff]   ;;  %v1919_v10 = vld [vmem:[#allocation2 + $0x28] sm:$0xff]   ;;  %s2061_s14 = scalar_lea.vmem %s1569_s13, 16  ;;  %s2065_s15 = scalar_lea.vmem %s1569_s13, 32 }
  0x12   :  { %1733 = vmatpush3.bf16.msra.mxu1 %v1912_v3  ;;  %1712 = vmatprep.subr.bf16.mxu0 %v1913_v4  ;;  %v1920_v11 = vld [vmem:[#allocation2 + $0xa8] sm:$0xff]   ;;  %v1921_v12 = vld [vmem:[#allocation2 + $0x60] sm:$0xff]   ;;  %v1925_v16 = vld [vmem:[#allocation2 + $0x58] sm:$0xff]   ;;  %v46_v28 = vsub.s32 1, %v2124_v23  ;;  %v54_v30 = vsub.s32 3, %v2124_v23  ;;  %v42_v32 = vsub.s32 0, %v2124_v23  ;;  %p2062_p5 = scmp.ne.s32.totalorder %s1569_s13, %s2061_s14  ;;  %p2066_p6 = scmp.lt.s32.totalorder %s1569_s13, %s1569_s13 }
  0x13   :  { %1734 = vmatprep.subr.bf16.mxu1 %v1914_v5  ;;  %v1922_v13 = vld [vmem:[#allocation2 + $0xe0] sm:$0xff]   ;;  %v1926_v17 = vld [vmem:[#allocation2 + $0xd8] sm:$0xff]   ;;  %v1929_v21 = vld [vmem:[#allocation2 + $0x50] sm:$0xff]   ;;  %v50_v34 = vsub.s32 2, %v2124_v23  ;;  %v62_v36 = vsub.s32 5, %v2124_v23  ;;  %v70_v38 = vsub.s32 7, %v2124_v23  ;;  %p2067_p7 = scmp.lt.s32.totalorder %s2065_s15, %s2061_s14 }
  0x14   :  { %v1923_v14 = vld [vmem:[#allocation2 + $0x20] sm:$0xff]   ;;  %v1927_v19 = vld [vmem:[#allocation2 + $0x18] sm:$0xff]   ;;  %v1930_v22 = vld [vmem:[#allocation2 + $0xd0] sm:$0xff]  }
  0x15   :  { %1713 = vmatpush3.bf16.msra.mxu0 %v1915_v6  ;;  %v1924_v15 = vld [vmem:[#allocation2 + $0xa0] sm:$0xff]   ;;  %v1928_v20 = vld [vmem:[#allocation2 + $0x98] sm:$0xff]   ;;  %v1931_v24 = vld [vmem:[#allocation2 + $0x10] sm:$0xff]   ;;  %p2068_p8 = por %p2067_p7, %p2066_p6 }
  0x16   :  { %1735 = vmatpush3.bf16.msra.mxu1 %v1916_v7  ;;  %1714 = vmatprep.subr.bf16.mxu0 %v1917_v8  ;;  %v1932_v25 = vld [vmem:[#allocation2 + $0x90] sm:$0xff]   ;;  %v1933_v26 = vld [vmem:[#allocation2 + $0x48] sm:$0xff]   ;;  %v1937_v33 = vld [vmem:[#allocation2 + $0x40] sm:$0xff]  }
  0x17   :  { %1736 = vmatprep.subr.bf16.mxu1 %v1918_v9  ;;  %v1934_v27 = vld [vmem:[#allocation2 + $0xc8] sm:$0xff]   ;;  %v1938_v35 = vld [vmem:[#allocation2 + $0xc0] sm:$0xff]   ;;  %v1941_v45 = vld [vmem:[#allocation2 + $0x178] sm:$0xff]   ;;  %p2069_p9 = pnand %p2068_p8, %p2062_p5 }
  0x18   :  { %v1935_v29 = vld [vmem:[#allocation2 + $0x8] sm:$0xff]   ;;  %v1939_v37 = vld [vmem:[#allocation2] sm:$0xff]   ;;  %v1942_v46 = vld [vmem:[#allocation2 + $0x1f8] sm:$0xff]  }
  0x19   :  { %1715 = vmatpush3.bf16.msra.mxu0 %v1919_v10  ;;  %v1936_v31 = vld [vmem:[#allocation2 + $0x88] sm:$0xff]   ;;  %v1940_v39 = vld [vmem:[#allocation2 + $0x80] sm:$0xff]   ;;  %v1943_v53 = vld [vmem:[#allocation2 + $0x138] sm:$0xff]  }
  0x1a   :  { %1737 = vmatpush3.bf16.msra.mxu1 %v1920_v11  ;;  %1716 = vmatprep.subr.bf16.mxu0 %v1921_v12  ;;  %v2135_v40 = vld [vmem:[%s2213_s0] sm:$0xff]  ;;  %v1944_v54 = vld [vmem:[#allocation2 + $0x1b8] sm:$0xff]   ;;  %v1945_v55 = vld [vmem:[#allocation2 + $0x170] sm:$0xff]  }
  0x1b   :  { %1738 = vmatprep.subr.bf16.mxu1 %v1922_v13  ;;  %v47_v41 = vrot.slane %v2135_v40, %v46_v28  ;;  %v55_v42 = vrot.slane %v2135_v40, %v54_v30  ;;  %v43_v43 = vrot.slane %v2135_v40, %v42_v32  ;;  %v51_v44 = vrot.slane %v2135_v40, %v50_v34  ;;  %v1946_v58 = vld [vmem:[#allocation2 + $0x1f0] sm:$0xff]   ;;  %v1949_v61 = vld [vmem:[#allocation2 + $0x168] sm:$0xff]   ;;  %v1953_v1 = vld [vmem:[#allocation2 + $0x160] sm:$0xff]  }
  0x1c   :  { %v63_v47 = vrot.slane %v2135_v40, %v62_v36  ;;  %v71_v48 = vrot.slane %v2135_v40, %v70_v38  ;;  %v1947_v59 = vld [vmem:[#allocation2 + $0x130] sm:$0xff]   ;;  %v1950_v62 = vld [vmem:[#allocation2 + $0x1e8] sm:$0xff]   ;;  %v1954_v2 = vld [vmem:[#allocation2 + $0x1e0] sm:$0xff]  }
  0x1d   :  { %1717 = vmatpush3.bf16.msra.mxu0 %v1923_v14  ;;  %v121_v49 = vpack.c.bf16 %v47_v41, %v47_v41  ;;  %v123_v50 = vpack.c.bf16 %v55_v42, %v55_v42  ;;  %v120_v51 = vpack.c.bf16 %v43_v43, %v43_v43  ;;  %v122_v52 = vpack.c.bf16 %v51_v44, %v51_v44  ;;  %v1948_v60 = vld [vmem:[#allocation2 + $0x1b0] sm:$0xff]   ;;  %v1951_v63 = vld [vmem:[#allocation2 + $0x128] sm:$0xff]   ;;  %v1955_v3 = vld [vmem:[#allocation2 + $0x120] sm:$0xff]  }
  0x1e   :  { %1739 = vmatpush3.bf16.msra.mxu1 %v1924_v15  ;;  %1718 = vmatprep.subr.bf16.mxu0 %v1925_v16  ;;  %v125_v56 = vpack.c.bf16 %v63_v47, %v63_v47  ;;  %v127_v57 = vpack.c.bf16 %v71_v48, %v71_v48  ;;  %v1952_v0 = vld [vmem:[#allocation2 + $0x1a8] sm:$0xff]   ;;  %v1956_v4 = vld [vmem:[#allocation2 + $0x1a0] sm:$0xff]   ;;  %v1957_v5 = vld [vmem:[#allocation2 + $0x158] sm:$0xff]   ;;  %v58_v14 = vsub.s32 4, %v2124_v23  ;;  %v66_v16 = vsub.s32 6, %v2124_v23 }
  0x1f   :  { %1740 = vmatprep.subr.bf16.mxu1 %v1926_v17  ;;  %1193 = vmatprep.mubr.bf16.mxu0 %v121_v49  ;;  %v1958_v6 = vld [vmem:[#allocation2 + $0x1d8] sm:$0xff]   ;;  %v1961_v9 = vld [vmem:[#allocation2 + $0x150] sm:$0xff]   ;;  %v1965_v13 = vld [vmem:[#allocation2 + $0x148] sm:$0xff]  }
  0x20   :  { %1233 = vmatprep.mubr.bf16.mxu1 %v123_v50  ;;  %v1959_v7 = vld [vmem:[#allocation2 + $0x118] sm:$0xff]   ;;  %v1962_v10 = vld [vmem:[#allocation2 + $0x1d0] sm:$0xff]   ;;  %v1966_v15 = vld [vmem:[#allocation2 + $0x1c8] sm:$0xff]  }
  0x21   :  { %1719 = vmatpush3.bf16.msra.mxu0 %v1927_v19  ;;  %v1960_v8 = vld [vmem:[#allocation2 + $0x198] sm:$0xff]   ;;  %v1963_v11 = vld [vmem:[#allocation2 + $0x110] sm:$0xff]   ;;  %v1967_v17 = vld [vmem:[#allocation2 + $0x108] sm:$0xff]  }
  0x22   :  { %1741 = vmatpush3.bf16.msra.mxu1 %v1928_v20  ;;  %1720 = vmatprep.subr.bf16.mxu0 %v1929_v21  ;;  %v1964_v12 = vld [vmem:[#allocation2 + $0x190] sm:$0xff]   ;;  %v1968_v18 = vld [vmem:[#allocation2 + $0x188] sm:$0xff]   ;;  %v1969_v19 = vld [vmem:[#allocation2 + $0x140] sm:$0xff]   ;;  %v59_v21 = vrot.slane %v2135_v40, %v58_v14 }
  0x23   :  { %1742 = vmatprep.subr.bf16.mxu1 %v1930_v22  ;;  %v1970_v20 = vld [vmem:[#allocation2 + $0x1c0] sm:$0xff]   ;;  %v67_v22 = vrot.slane %v2135_v40, %v66_v16  ;;  %v1979_v40 = vld [vmem:[#allocation2 + $0x230] sm:$0xff]   ;;  %v1981_v42 = vld [vmem:[#allocation2 + $0x268] sm:$0xff]  }
  0x24   :  { %v1980_v41 = vld [vmem:[#allocation2 + $0x2b0] sm:$0xff]   ;;  %v1982_v43 = vld [vmem:[#allocation2 + $0x2e8] sm:$0xff]   ;;  %v1986_v47 = vld [vmem:[#allocation2 + $0x2e0] sm:$0xff]  }
  0x25   :  { %1721 = vmatpush3.bf16.msra.mxu0 %v1931_v24  ;;  %v1971_v24 = vld [vmem:[#allocation2 + $0x100] sm:$0xff]   ;;  %v1983_v44 = vld [vmem:[#allocation2 + $0x228] sm:$0xff]   ;;  %v1989_v50 = vld [vmem:[#allocation2 + $0x258] sm:$0xff]  }
  0x26   :  { %1743 = vmatpush3.bf16.msra.mxu1 %v1932_v25  ;;  %1722 = vmatprep.subr.bf16.mxu0 %v1933_v26  ;;  %v1972_v25 = vld [vmem:[#allocation2 + $0x180] sm:$0xff]   ;;  %v1973_v26 = vld [vmem:[#allocation2 + $0x278] sm:$0xff]   ;;  %v2038_v23 = vld [vmem:[%s2216_s3 + $0x10] sm:$0xff]  }
  0x27   :  { %1744 = vmatprep.subr.bf16.mxu1 %v1934_v27  ;;  %v124_v27 = vpack.c.bf16 %v59_v21, %v59_v21  ;;  %v1987_v48 = vld [vmem:[#allocation2 + $0x220] sm:$0xff]   ;;  %v2015_v21 = vld [vmem:[#allocation2 + $0x328] sm:$0xff]  }
  0x28   :  { %v1988_v49 = vld [vmem:[#allocation2 + $0x2a0] sm:$0xff]  }
  0x29   :  { %1723 = vmatpush3.bf16.msra.mxu0 %v1935_v29  ;;  %v126_v29 = vpack.c.bf16 %v67_v22, %v67_v22  ;;  %v2016_v22 = vld [vmem:[#allocation2 + $0x3a8] sm:$0xff]  }
  0x2a   :  { %1745 = vmatpush3.bf16.msra.mxu1 %v1936_v31  ;;  %1724 = vmatprep.subr.bf16.mxu0 %v1937_v33  ;;  %v1974_v31 = vld [vmem:[#allocation2 + $0x2f8] sm:$0xff]  }
  0x2b   :  { %1746 = vmatprep.subr.bf16.mxu1 %v1938_v35  ;;  %v1975_v33 = vld [vmem:[#allocation2 + $0x238] sm:$0xff]  }
  0x2c   :  { %v1976_v35 = vld [vmem:[#allocation2 + $0x2b8] sm:$0xff]  }
  0x2d   :  { %1725 = vmatpush3.bf16.msra.mxu0 %v1939_v37  ;;  %v1977_v37 = vld [vmem:[#allocation2 + $0x270] sm:$0xff]  }
  0x2e   :  { %1747 = vmatpush3.bf16.msra.mxu1 %v1940_v39  ;;  %1754 = vmatprep.subr.bf16.mxu0 %v1941_v45  ;;  %v1978_v39 = vld [vmem:[#allocation2 + $0x2f0] sm:$0xff]   ;;  %v1984_v45 = vld [vmem:[#allocation2 + $0x2a8] sm:$0xff]  }
  0x2f   :  { %1776 = vmatprep.subr.bf16.mxu1 %v1942_v46  ;;  %v1985_v46 = vld [vmem:[#allocation2 + $0x260] sm:$0xff]  }
  0x30   :  { %1194 = vmatmul.mubr.bf16.vlgmr.msra.gmra.mxu0 %v120_v51  ;;  %v1990_v51 = vld [vmem:[#allocation2 + $0x2d8] sm:$0xff]  }
  0x31   :  { %1234 = vmatmul.mubr.bf16.vlgmr.msra.gmra.mxu1 %v122_v52  ;;  %1755 = vmatpush3.bf16.msra.mxu0 %v1943_v53  ;;  %v1991_v52 = vld [vmem:[#allocation2 + $0x218] sm:$0xff]  }
  0x32   :  { %1777 = vmatpush3.bf16.msra.mxu1 %v1944_v54  ;;  %1756 = vmatprep.subr.bf16.mxu0 %v1945_v55  ;;  %v1992_v53 = vld [vmem:[#allocation2 + $0x298] sm:$0xff]   ;;  %v1993_v54 = vld [vmem:[#allocation2 + $0x250] sm:$0xff]  }
  0x33   :  { %1778 = vmatprep.subr.bf16.mxu1 %v1946_v58  ;;  %1273 = vmatprep.mubr.bf16.mxu0 %v125_v56  ;;  %v1994_v55 = vld [vmem:[#allocation2 + $0x2d0] sm:$0xff]   ;;  %v1997_v58 = vld [vmem:[#allocation2 + $0x248] sm:$0xff]  }
  0x34   :  { %1313 = vmatprep.mubr.bf16.mxu1 %v127_v57  ;;  %v1995_v56 = vld [vmem:[#allocation2 + $0x210] sm:$0xff]  }
  0x35   :  { %1757 = vmatpush3.bf16.msra.mxu0 %v1947_v59  ;;  %v1996_v57 = vld [vmem:[#allocation2 + $0x290] sm:$0xff]   ;;  %v1998_v59 = vld [vmem:[#allocation2 + $0x2c8] sm:$0xff]  }
  0x36   :  { %1779 = vmatpush3.bf16.msra.mxu1 %v1948_v60  ;;  %1758 = vmatprep.subr.bf16.mxu0 %v1949_v61  ;;  %v1999_v60 = vld [vmem:[#allocation2 + $0x208] sm:$0xff]  }
  0x37   :  { %1780 = vmatprep.subr.bf16.mxu1 %v1950_v62  ;;  %v2000_v61 = vld [vmem:[#allocation2 + $0x288] sm:$0xff]   ;;  %v2001_v62 = vld [vmem:[#allocation2 + $0x240] sm:$0xff]  }
  0x39   :  { %1759 = vmatpush3.bf16.msra.mxu0 %v1951_v63  ;;  %v2002_v63 = vld [vmem:[#allocation2 + $0x2c0] sm:$0xff]  }
  0x3a   :  { %1781 = vmatpush3.bf16.msra.mxu1 %v1952_v0  ;;  %1760 = vmatprep.subr.bf16.mxu0 %v1953_v1  ;;  %v2003_v0 = vld [vmem:[#allocation2 + $0x200] sm:$0xff]  }
  0x3b   :  { %1782 = vmatprep.subr.bf16.mxu1 %v1954_v2  ;;  %v2004_v1 = vld [vmem:[#allocation2 + $0x280] sm:$0xff]   ;;  %v2166_v2 = vld [vmem:[%s2213_s0 + $0x8] sm:$0xff] }
  0x3d   :  { %1761 = vmatpush3.bf16.msra.mxu0 %v1955_v3  ;;  %v79_v3 = vrot.slane %v2166_v2, %v46_v28  ;;  %v103_v28 = vrot.slane %v2166_v2, %v70_v38  ;;  %v2011_v38 = vld [vmem:[#allocation2 + $0x330] sm:$0xff]  }
  0x3e   :  { %1783 = vmatpush3.bf16.msra.mxu1 %v1956_v4  ;;  %1762 = vmatprep.subr.bf16.mxu0 %v1957_v5  ;;  %v87_v4 = vrot.slane %v2166_v2, %v54_v30  ;;  %v75_v5 = vrot.slane %v2166_v2, %v42_v32  ;;  %v2007_v32 = vld [vmem:[#allocation2 + $0x338] sm:$0xff]  }
  0x3f   :  { %1784 = vmatprep.subr.bf16.mxu1 %v1958_v6  ;;  %v83_v6 = vrot.slane %v2166_v2, %v50_v34  ;;  %v129_v30 = vpack.c.bf16 %v79_v3, %v79_v3  ;;  %v2008_v34 = vld [vmem:[#allocation2 + $0x3b8] sm:$0xff]  }
  0x41   :  { %1763 = vmatpush3.bf16.msra.mxu0 %v1959_v7  ;;  %v2005_v7 = vld [vmem:[#allocation2 + $0x378] sm:$0xff]  }
  0x42   :  { %1785 = vmatpush3.bf16.msra.mxu1 %v1960_v8  ;;  %1764 = vmatprep.subr.bf16.mxu0 %v1961_v9  ;;  %v2006_v8 = vld [vmem:[#allocation2 + $0x3f8] sm:$0xff]   ;;  %v95_v9 = vrot.slane %v2166_v2, %v62_v36  ;;  %v2010_v36 = vld [vmem:[#allocation2 + $0x3f0] sm:$0xff]  }
  0x43   :  { %1786 = vmatprep.subr.bf16.mxu1 %v1962_v10  ;;  %v131_v10 = vpack.c.bf16 %v87_v4, %v87_v4 }
  0x45   :  { %1765 = vmatpush3.bf16.msra.mxu0 %v1963_v11  ;;  %v128_v11 = vpack.c.bf16 %v75_v5, %v75_v5 }
  0x46   :  { %1787 = vmatpush3.bf16.msra.mxu1 %v1964_v12  ;;  %1766 = vmatprep.subr.bf16.mxu0 %v1965_v13  ;;  %v130_v12 = vpack.c.bf16 %v83_v6, %v83_v6  ;;  %v2009_v13 = vld [vmem:[#allocation2 + $0x370] sm:$0xff]  }
  0x47   :  { %1788 = vmatprep.subr.bf16.mxu1 %v1966_v15  ;;  %v133_v15 = vpack.c.bf16 %v95_v9, %v95_v9 }
  0x49   :  { %1767 = vmatpush3.bf16.msra.mxu0 %v1967_v17  ;;  %v135_v17 = vpack.c.bf16 %v103_v28, %v103_v28 }
  0x4a   :  { %1789 = vmatpush3.bf16.msra.mxu1 %v1968_v18  ;;  %1768 = vmatprep.subr.bf16.mxu0 %v1969_v19  ;;  %v2012_v18 = vld [vmem:[#allocation2 + $0x3b0] sm:$0xff]   ;;  %v2013_v19 = vld [vmem:[#allocation2 + $0x368] sm:$0xff]  }
  0x4b   :  { %1790 = vmatprep.subr.bf16.mxu1 %v1970_v20  ;;  %v2014_v20 = vld [vmem:[#allocation2 + $0x3e8] sm:$0xff]  }
  0x4d   :  { %1769 = vmatpush3.bf16.msra.mxu0 %v1971_v24  ;;  %v2017_v24 = vld [vmem:[#allocation2 + $0x360] sm:$0xff]  }
  0x4e   :  { %1791 = vmatpush3.bf16.msra.mxu1 %v1972_v25  ;;  %1798 = vmatprep.subr.bf16.mxu0 %v1973_v26  ;;  %v2018_v25 = vld [vmem:[#allocation2 + $0x3e0] sm:$0xff]  }
  0x4f   :  { %1820 = vmatprep.subr.bf16.mxu1 %v1974_v31  ;;  %v2019_v26 = vld [vmem:[#allocation2 + $0x320] sm:$0xff]   ;;  %v2022_v31 = vld [vmem:[#allocation2 + $0x3d8] sm:$0xff]  }
  0x50   :  { %1274 = vmatmul.mubr.bf16.vlgmr.msra.gmra.mxu0 %v124_v27  ;;  %v2020_v27 = vld [vmem:[#allocation2 + $0x3a0] sm:$0xff]  }
  0x51   :  { %1314 = vmatmul.mubr.bf16.vlgmr.msra.gmra.mxu1 %v126_v29  ;;  %1799 = vmatpush3.bf16.msra.mxu0 %v1975_v33  ;;  %v2021_v29 = vld [vmem:[#allocation2 + $0x358] sm:$0xff]  }
  0x52   :  { %1821 = vmatpush3.bf16.msra.mxu1 %v1976_v35  ;;  %1800 = vmatprep.subr.bf16.mxu0 %v1977_v37  ;;  %v2023_v33 = vld [vmem:[#allocation2 + $0x318] sm:$0xff]   ;;  %v2025_v37 = vld [vmem:[#allocation2 + $0x350] sm:$0xff]  }
  0x53   :  { %1822 = vmatprep.subr.bf16.mxu1 %v1978_v39  ;;  %1353 = vmatprep.mubr.bf16.mxu0 %v129_v30  ;;  %v2024_v35 = vld [vmem:[#allocation2 + $0x398] sm:$0xff]   ;;  %v2026_v39 = vld [vmem:[#allocation2 + $0x3d0] sm:$0xff]  }
  0x54   :  { %1393 = vmatprep.mubr.bf16.mxu1 %v131_v10 }
  0x55   :  { %1801 = vmatpush3.bf16.msra.mxu0 %v1979_v40  ;;  %v2027_v40 = vld [vmem:[#allocation2 + $0x310] sm:$0xff]  }
  0x56   :  { %1823 = vmatpush3.bf16.msra.mxu1 %v1980_v41  ;;  %1802 = vmatprep.subr.bf16.mxu0 %v1981_v42  ;;  %v2028_v41 = vld [vmem:[#allocation2 + $0x390] sm:$0xff]   ;;  %v2029_v42 = vld [vmem:[#allocation2 + $0x348] sm:$0xff]  }
  0x57   :  { %1824 = vmatprep.subr.bf16.mxu1 %v1982_v43  ;;  %v2030_v43 = vld [vmem:[#allocation2 + $0x3c8] sm:$0xff]  }
  0x59   :  { %1803 = vmatpush3.bf16.msra.mxu0 %v1983_v44  ;;  %v2031_v44 = vld [vmem:[#allocation2 + $0x308] sm:$0xff]  }
  0x5a   :  { %1825 = vmatpush3.bf16.msra.mxu1 %v1984_v45  ;;  %1804 = vmatprep.subr.bf16.mxu0 %v1985_v46  ;;  %v2032_v45 = vld [vmem:[#allocation2 + $0x388] sm:$0xff]   ;;  %v2033_v46 = vld [vmem:[#allocation2 + $0x340] sm:$0xff]  }
  0x5b   :  { %1826 = vmatprep.subr.bf16.mxu1 %v1986_v47  ;;  %v2034_v47 = vld [vmem:[#allocation2 + $0x3c0] sm:$0xff]  }
  0x5d   :  { %1805 = vmatpush3.bf16.msra.mxu0 %v1987_v48  ;;  %v91_v48 = vrot.slane %v2166_v2, %v58_v14  ;;  %v2037_v14 = vld [vmem:[%s2216_s3 + $0x18] sm:$0xff]  }
  0x5e   :  { %1827 = vmatpush3.bf16.msra.mxu1 %v1988_v49  ;;  %1806 = vmatprep.subr.bf16.mxu0 %v1989_v50  ;;  %v99_v49 = vrot.slane %v2166_v2, %v66_v16  ;;  %v2035_v50 = vld [vmem:[#allocation2 + $0x300] sm:$0xff]   ;;  %v2039_v16 = vld [vmem:[%s2216_s3 + $0x8] sm:$0xff]  }
  0x5f   :  { %1828 = vmatprep.subr.bf16.mxu1 %v1990_v51  ;;  %v2036_v51 = vld [vmem:[#allocation2 + $0x380] sm:$0xff]  }
  0x61   :  { %1807 = vmatpush3.bf16.msra.mxu0 %v1991_v52  ;;  %v132_v52 = vpack.c.bf16 %v91_v48, %v91_v48 }
  0x62   :  { %1829 = vmatpush3.bf16.msra.mxu1 %v1992_v53  ;;  %1808 = vmatprep.subr.bf16.mxu0 %v1993_v54  ;;  %v134_v53 = vpack.c.bf16 %v99_v49, %v99_v49  ;;  %v2088_v54 = vmov 0.0  }
  0x63   :  { %1830 = vmatprep.subr.bf16.mxu1 %v1994_v55  ;;  %v2040_v55 = vld [vmem:[%s2216_s3] sm:$0xff]  }
  0x65   :  { %1809 = vmatpush3.bf16.msra.mxu0 %v1995_v56 }
  0x66   :  { %1831 = vmatpush3.bf16.msra.mxu1 %v1996_v57  ;;  %1810 = vmatprep.subr.bf16.mxu0 %v1997_v58  ;;  %v392_v58 = vld [vmem:[%s2215_s2] sm:$0x1] }
  0x67   :  { %1832 = vmatprep.subr.bf16.mxu1 %v1998_v59 }
  0x69   :  { %1811 = vmatpush3.bf16.msra.mxu0 %v1999_v60 }
  0x6a   :  { %1833 = vmatpush3.bf16.msra.mxu1 %v2000_v61  ;;  %1812 = vmatprep.subr.bf16.mxu0 %v2001_v62 }
  0x6b   :  { %1834 = vmatprep.subr.bf16.mxu1 %v2002_v63 }
  0x6d   :  { %1813 = vmatpush3.bf16.msra.mxu0 %v2003_v0 }
  0x6e   :  { %1835 = vmatpush3.bf16.msra.mxu1 %v2004_v1  ;;  %1842 = vmatprep.subr.bf16.mxu0 %v2005_v7 }
  0x6f   :  { %1864 = vmatprep.subr.bf16.mxu1 %v2006_v8 }
  0x70   :  { %1354 = vmatmul.mubr.bf16.vlgmr.msra.gmra.mxu0 %v128_v11 }
  0x71   :  { %1394 = vmatmul.mubr.bf16.vlgmr.msra.gmra.mxu1 %v130_v12  ;;  %1843 = vmatpush3.bf16.msra.mxu0 %v2007_v32 }
  0x72   :  { %1865 = vmatpush3.bf16.msra.mxu1 %v2008_v34  ;;  %1844 = vmatprep.subr.bf16.mxu0 %v2009_v13 }
  0x73   :  { %1866 = vmatprep.subr.bf16.mxu1 %v2010_v36  ;;  %1433 = vmatprep.mubr.bf16.mxu0 %v133_v15 }
  0x74   :  { %1473 = vmatprep.mubr.bf16.mxu1 %v135_v17 }
  0x75   :  { %1845 = vmatpush3.bf16.msra.mxu0 %v2011_v38 }
  0x76   :  { %1867 = vmatpush3.bf16.msra.mxu1 %v2012_v18  ;;  %1846 = vmatprep.subr.bf16.mxu0 %v2013_v19 }
  0x77   :  { %1868 = vmatprep.subr.bf16.mxu1 %v2014_v20 }
  0x79   :  { %1847 = vmatpush3.bf16.msra.mxu0 %v2015_v21 }
  0x7a   :  { %1869 = vmatpush3.bf16.msra.mxu1 %v2016_v22  ;;  %1848 = vmatprep.subr.bf16.mxu0 %v2017_v24 }
  0x7b   :  { %1870 = vmatprep.subr.bf16.mxu1 %v2018_v25 }
  0x7d   :  { %1849 = vmatpush3.bf16.msra.mxu0 %v2019_v26 }
  0x7e   :  { %1871 = vmatpush3.bf16.msra.mxu1 %v2020_v27  ;;  %1850 = vmatprep.subr.bf16.mxu0 %v2021_v29 }
  0x7f   :  { %1872 = vmatprep.subr.bf16.mxu1 %v2022_v31 }
  0x81   :  { %1851 = vmatpush3.bf16.msra.mxu0 %v2023_v33 }
  0x82   :  { %1873 = vmatpush3.bf16.msra.mxu1 %v2024_v35  ;;  %1852 = vmatprep.subr.bf16.mxu0 %v2025_v37 }
  0x83   :  { %1874 = vmatprep.subr.bf16.mxu1 %v2026_v39 }
  0x85   :  { %1853 = vmatpush3.bf16.msra.mxu0 %v2027_v40 }
  0x86   :  { %1875 = vmatpush3.bf16.msra.mxu1 %v2028_v41  ;;  %1854 = vmatprep.subr.bf16.mxu0 %v2029_v42 }
  0x87   :  { %1876 = vmatprep.subr.bf16.mxu1 %v2030_v43 }
  0x89   :  { %1855 = vmatpush3.bf16.msra.mxu0 %v2031_v44 }
  0x8a   :  { %1877 = vmatpush3.bf16.msra.mxu1 %v2032_v45  ;;  %1856 = vmatprep.subr.bf16.mxu0 %v2033_v46  ;;  %v1491_v46 = vld [vmem:[%s2217_s4] sm:$0x1] }
  0x8b   :  { %1878 = vmatprep.subr.bf16.mxu1 %v2034_v47 }
  0x8d   :  { %1857 = vmatpush3.bf16.msra.mxu0 %v2035_v50 }
  0x8e   :  { %1879 = vmatpush3.bf16.msra.mxu1 %v2036_v51  ;;  %1891 = vmatprep.subr.bf16.mxu0 %v2088_v54 }
  0x90   :  { %1434 = vmatmul.mubr.bf16.vlgmr.msra.gmra.mxu0 %v132_v52 }
  0x91   :  { %1474 = vmatmul.mubr.bf16.vlgmr.msra.gmra.mxu1 %v134_v53  ;;  %1892 = vmatpush3.bf16.msra.mxu0 %v2037_v14 }
  0x92   :  { %1893 = vmatprep.subr.bf16.mxu0 %v2088_v54  ;;  %1899 = vmatprep.mubr.msk.bf16.mxu0 %vm2089_vm0, %v2088_v54 }
  0x95   :  { %1894 = vmatpush3.bf16.msra.mxu0 %v2038_v23 }
  0x96   :  { %1895 = vmatprep.subr.bf16.mxu0 %v2088_v54 }
  0x99   :  { %1896 = vmatpush3.bf16.msra.mxu0 %v2039_v16 }
  0x9a   :  { %1897 = vmatprep.subr.bf16.mxu0 %v2088_v54 }
  0x9d   :  { %1898 = vmatpush3.bf16.msra.mxu0 %v2040_v55 }
  0xf0   :  { %v1726_v56 = vpop.f32.mrf.mxu0 }
  0xf1   :  { %v1748_v57 = vpop.f32.mrf.mxu1 }
  0xf2   :  { %v1727_v59 = vpop.f32.mrf.mxu0 }
  0xf3   :  { %v1749_v60 = vpop.f32.mrf.mxu1  ;;  %v1728_v61 = vadd.f32 %v1727_v59, %v1726_v56 }
  0xf4   :  { %v1750_v62 = vadd.f32 %v1749_v60, %v1748_v57  ;;  %v1729_v63 = vpop.f32.mrf.mxu0 }
  0xf5   :  { %v1751_v0 = vpop.f32.mrf.mxu1  ;;  %v1196_v1 = vadd.f32 %v1728_v61, %v392_v58 }
  0xf6   :  { %v1730_v2 = vpop.f32.mrf.mxu0 }
  0xf7   :  { %v1752_v3 = vpop.f32.mrf.mxu1  ;;  %v1236_v4 = vadd.f32 %v1750_v62, %v1196_v1 }
 0x110   :  { %v1770_v5 = vpop.f32.mrf.mxu0 }
 0x111   :  { %v1792_v6 = vpop.f32.mrf.mxu1 }
 0x112   :  { %v1771_v7 = vpop.f32.mrf.mxu0 }
 0x113   :  { %v1793_v8 = vpop.f32.mrf.mxu1  ;;  %v1772_v38 = vadd.f32 %v1771_v7, %v1770_v5 }
 0x114   :  { %v1773_v9 = vpop.f32.mrf.mxu0  ;;  %v1794_v19 = vadd.f32 %v1793_v8, %v1792_v6 }
 0x115   :  { %v1795_v28 = vpop.f32.mrf.mxu1  ;;  %v1276_v18 = vadd.f32 %v1772_v38, %v1236_v4 }
 0x116   :  { %v1774_v30 = vpop.f32.mrf.mxu0 }
 0x117   :  { %v1796_v10 = vpop.f32.mrf.mxu1  ;;  %v1316_v21 = vadd.f32 %v1794_v19, %v1276_v18 }
 0x130   :  { %v1814_v11 = vpop.f32.mrf.mxu0 }
 0x131   :  { %v1836_v32 = vpop.f32.mrf.mxu1 }
 0x132   :  { %v1815_v12 = vpop.f32.mrf.mxu0 }
 0x133   :  { %v1837_v34 = vpop.f32.mrf.mxu1  ;;  %v1816_v20 = vadd.f32 %v1815_v12, %v1814_v11 }
 0x134   :  { %v1817_v13 = vpop.f32.mrf.mxu0  ;;  %v1838_v24 = vadd.f32 %v1837_v34, %v1836_v32 }
 0x135   :  { %v1839_v15 = vpop.f32.mrf.mxu1  ;;  %v1356_v22 = vadd.f32 %v1816_v20, %v1316_v21 }
 0x136   :  { %v1818_v17 = vpop.f32.mrf.mxu0 }
 0x137   :  { %v1840_v36 = vpop.f32.mrf.mxu1  ;;  %v1396_v31 = vadd.f32 %v1838_v24, %v1356_v22 }
 0x150   :  { %v1858_v25 = vpop.f32.mrf.mxu0 }
 0x151   :  { %v1880_v26 = vpop.f32.mrf.mxu1 }
 0x152   :  { %v1859_v27 = vpop.f32.mrf.mxu0 }
 0x153   :  { %v1881_v29 = vpop.f32.mrf.mxu1  ;;  %v1860_v33 = vadd.f32 %v1859_v27, %v1858_v25 }
 0x154   :  { %v1861_v35 = vpop.f32.mrf.mxu0  ;;  %v1882_v40 = vadd.f32 %v1881_v29, %v1880_v26 }
 0x155   :  { %v1883_v37 = vpop.f32.mrf.mxu1  ;;  %v1436_v39 = vadd.f32 %v1860_v33, %v1396_v31 }
 0x156   :  { %v1862_v41 = vpop.f32.mrf.mxu0 }
 0x157   :  { %v1884_v42 = vpop.f32.mrf.mxu1  ;;  %v1476_v43 = vadd.f32 %v1882_v40, %v1436_v39 }
 0x159   :  { %v1481_v44 = vmax.f32 %v1476_v43, 0.0 }
 0x15b   :  { %v1482_v45 = vpack.c.bf16 %v1481_v44, %v1481_v44 }
 0x15d   :  { %1900 = vmatmul.mubr.msk.bf16.vlgmr.msra.gmra.mxu0 %vm1516_vm1, %v1482_v45 }
 0x21d   :  { %v1554_v47 = vpop.f32.mrf.mxu0 }
 0x21e   :  { %v1555_v48 = vadd.f32 %v1554_v47, %v1491_v46 }
 0x21f   :  { %v1901_v49 = vpop.f32.mrf.mxu0 }
 0x220   :  { %1561 = vst.msk [vmem:[#allocation5] sm:$0x1] %vm1560_vm2, %v1555_v48 }
 0x221   :  { %v1557_v50 = vpop.f32.mrf.mxu0 }
 0x222   :  { %2072 = shalt.err (!%p2069_p9)
}
 0x223   :  { %1571 = dma.vmem_to_hbm [thread:$0]  %s1569_s13, 16, %s2218_s5, [#allocation4]   ;;  %v1902_v51 = vpop.f32.mrf.mxu0 }
 0x224   :  { %2083 = dma.done.wait [#allocation4], 16  }
 0x225   :  { %2084 = vsyncadd [#allocation4], 4294967280 }
 0x226   :  { %1575 = vsyncpa [#allocation3], 1 }
 0x227   :  { %1576 = vsyncpa [#allocation4], 1 }

</bundles_post_ra>
